<compile_context>
chip_gen: v6e
topology: v6e:2x2x1
jax: 0.10.0
libtpu: 0.0.40
codegen_flags: <defaults>
</compile_context>

<pallas_src>
import jax
import jax.numpy as jnp
from jax.experimental import pallas as pl
from jax.experimental.pallas import tpu as pltpu


_VMEM_LIMIT = 48 * 1024 * 1024   # < 64 MiB physical VMEM on v7x; needed on v5e
_BUDGET = 6 << 20                # per-buffer tile budget (bytes)
_LANE_CAP = 32768                # max lanes per tile (bounds (1, tile_n) param blocks)
_ROW_CAP = 2048                  # max rows per tile (bounds lane-padded (tile_m,1) params)
_SMALL = 1 << 20                 # below this total size, fallback layouts allowed
_MIN_LANE = 256                  # prefer >= this many lanes for dense stores


# ----------------------------------------------------------------------------
# Tile sizing shared by the affine and stats kernels.
# ----------------------------------------------------------------------------
def _tile_sizes(rows, lanes, itemsize, budget_bytes=_BUDGET):
    # Lane tile: full extent when small, else a multiple of 128 within budget.
    if lanes * itemsize * 8 <= budget_bytes and lanes <= _LANE_CAP:
        tile_n = lanes
    else:
        tile_n = min(_LANE_CAP,
                     max(128, (budget_bytes // (8 * itemsize)) // 128 * 128))

    # Row tile: fill the budget; multiple of 8 (or full extent); capped so the
    # lane-padded (tile_m, 1) parameter blocks stay small in VMEM.
    max_rows = max(1, budget_bytes // (tile_n * itemsize))
    tile_m = rows if rows <= max_rows else max(8, (max_rows // 8) * 8)
    if tile_m > _ROW_CAP:
        tile_m = _ROW_CAP
    if tile_m > rows:
        tile_m = rows

    # v7x has 2 TensorCores: make sure mid/large tensors produce >= 2 blocks
    # so the "parallel" grid axes can actually be sharded (no-op on v5e/v6e).
    total_bytes = rows * lanes * itemsize
    if (total_bytes >= (2 << 20)
            and pl.cdiv(rows, tile_m) * pl.cdiv(lanes, tile_n) < 2):
        if rows >= 16:
            tile_m = max(8, (((rows + 1) // 2) + 7) // 8 * 8)
        elif lanes >= 256:
            tile_n = max(128, (((lanes + 1) // 2) + 127) // 128 * 128)
    return tile_m, tile_n


# ----------------------------------------------------------------------------
# Affine kernel: one FMA per element.  a_ref/b_ref are a (tile_m, 1) column or
# a (1, tile_n) row; jnp broadcasting handles both.  The f32 upcast is free
# (VPU slack is huge in an HBM-bound kernel).
# ----------------------------------------------------------------------------
def _affine_kernel(x_ref, a_ref, b_ref, o_ref):
    x = x_ref[...].astype(jnp.float32)
    o_ref[...] = (x * a_ref[...] + b_ref[...]).astype(o_ref.dtype)


def _affine_2d(x2d, a2d, b2d, *, col_params):
    rows, lanes = x2d.shape
    itemsize = jnp.dtype(x2d.dtype).itemsize
    tile_m, tile_n = _tile_sizes(rows, lanes, itemsize)
    grid = (pl.cdiv(rows, tile_m), pl.cdiv(lanes, tile_n))

    if col_params:
        # Per-row params; block index is constant in j so they are only
        # re-DMA'd when the row block changes.
        p_block, p_index = (tile_m, 1), (lambda i, j: (i, 0))
    else:
        p_block, p_index = (1, tile_n), (lambda i, j: (0, j))

    return pl.pallas_call(
        _affine_kernel,
        out_shape=jax.ShapeDtypeStruct((rows, lanes), x2d.dtype),
        grid_spec=pltpu.PrefetchScalarGridSpec(
            num_scalar_prefetch=0,
            grid=grid,
            in_specs=[
                pl.BlockSpec((tile_m, tile_n), lambda i, j: (i, j)),  # x tile
                pl.BlockSpec(p_block, p_index),                       # scale a
                pl.BlockSpec(p_block, p_index),                       # bias  b
            ],
            out_specs=pl.BlockSpec((tile_m, tile_n), lambda i, j: (i, j)),
        ),
        compiler_params=pltpu.CompilerParams(
            dimension_semantics=("parallel", "parallel"),
            vmem_limit_bytes=_VMEM_LIMIT,
        ),
    )(x2d, a2d, b2d)


def _apply_channel_affine(x_nchw, a_c, b_c):
    """out[n,c,h,w] = a_c[c] * x[n,c,h,w] + b_c[c] via the Pallas kernel."""
    B, C, H, W = x_nchw.shape
    hw = H * W
    itemsize = jnp.dtype(x_nchw.dtype).itemsize
    total_bytes = B * C * hw * itemsize
    a_c = a_c.astype(jnp.float32)
    b_c = b_c.astype(jnp.float32)

    if hw >= _MIN_LANE or total_bytes > _SMALL:
        # (B*C, H*W): channel in the row index -> tiny (rows, 1) params, no
        # extra HBM read traffic.  Also used for large small-hw tensors.
        rows, lanes = B * C, hw
        a2d = jnp.tile(a_c, B).reshape(rows, 1)
        b2d = jnp.tile(b_c, B).reshape(rows, 1)
        out2d = _affine_2d(x_nchw.reshape(rows, lanes), a2d, b2d, col_params=True)
    elif B == 1 or C * hw >= _MIN_LANE:
        # Tiny tensor: (B, C*H*W), channel in the lane index.  The expanded
        # params are at most x-sized, acceptable only because x is tiny here.
        rows, lanes = B, C * hw
        a2d = jnp.repeat(a_c, hw).reshape(1, lanes)
        b2d = jnp.repeat(b_c, hw).reshape(1, lanes)
        out2d = _affine_2d(x_nchw.reshape(rows, lanes), a2d, b2d, col_params=False)
    else:
        # Tiny tensor: flatten everything into the lane dimension.
        rows, lanes = 1, B * C * hw
        a2d = jnp.tile(jnp.repeat(a_c, hw), B).reshape(1, lanes)
        b2d = jnp.tile(jnp.repeat(b_c, hw), B).reshape(1, lanes)
        out2d = _affine_2d(x_nchw.reshape(rows, lanes), a2d, b2d, col_params=False)

    return out2d.reshape(B, C, H, W)


# ----------------------------------------------------------------------------
# Fused per-channel statistics: one HBM pass over (B*C, H*W), f32 accumulation
# of sum and sum-of-squares per row.  Padded lanes of ragged edge tiles are
# masked to zero (required: this kernel reduces across lanes).
# ----------------------------------------------------------------------------
def _make_stats_kernel(lanes, tile_n):
    need_mask = (lanes % tile_n) != 0

    def kernel(x_ref, sum_ref, sq_ref):
        @pl.when(pl.program_id(1) == 0)
        def _():
            sum_ref[...] = jnp.zeros_like(sum_ref)
            sq_ref[...] = jnp.zeros_like(sq_ref)

        x = x_ref[...].astype(jnp.float32)
        if need_mask:
            col = (jax.lax.broadcasted_iota(jnp.int32, x.shape, 1)
                   + pl.program_id(1) * tile_n)
            x = jnp.where(col < lanes, x, 0.0)
        sum_ref[...] += jnp.sum(x, axis=1, keepdims=True)
        sq_ref[...] += jnp.sum(x * x, axis=1, keepdims=True)

    return kernel


def _channel_stats(x_nchw):
    """Per-channel biased mean/var (f32 accumulation, single pass over x)."""
    B, C, H, W = x_nchw.shape
    hw = H * W
    rows, lanes = B * C, hw
    itemsize = jnp.dtype(x_nchw.dtype).itemsize
    tile_m, tile_n = _tile_sizes(rows, lanes, itemsize)
    grid = (pl.cdiv(rows, tile_m), pl.cdiv(lanes, tile_n))

    sums, sqs = pl.pallas_call(
        _make_stats_kernel(lanes, tile_n),
        out_shape=(jax.ShapeDtypeStruct((rows, 1), jnp.float32),
                   jax.ShapeDtypeStruct((rows, 1), jnp.float32)),
        grid_spec=pltpu.PrefetchScalarGridSpec(
            num_scalar_prefetch=0,
            grid=grid,
            in_specs=[pl.BlockSpec((tile_m, tile_n), lambda i, j: (i, j))],
            out_specs=(pl.BlockSpec((tile_m, 1), lambda i, j: (i, 0)),
                       pl.BlockSpec((tile_m, 1), lambda i, j: (i, 0))),
        ),
        compiler_params=pltpu.CompilerParams(
            dimension_semantics=("parallel", "arbitrary"),
            vmem_limit_bytes=_VMEM_LIMIT,
        ),
    )(x_nchw.reshape(rows, lanes))

    count = B * hw
    mean = sums.reshape(B, C).sum(axis=0) / count
    mean_sq = sqs.reshape(B, C).sum(axis=0) / count
    var = jnp.maximum(mean_sq - mean * mean, 0.0)   # biased (unbiased=False)
    return mean, var


# ----------------------------------------------------------------------------
# Module forward (eval / train), mirroring BatchNormm2D.forward exactly.
# ----------------------------------------------------------------------------
def batchnormm2d_eval(x, runningmean, runningvar, *, epsilon=1e-5):
    """Inference: out = (x - runningmean) / sqrt(m/(m-1) * runningvar + eps)."""
    B, C, H, W = x.shape
    assert C == runningmean.shape[0]
    m = B * H * W
    corr = m / (m - 1) if m > 1 else 1.0          # guard m == 1
    inv_std = jax.lax.rsqrt(corr * runningvar.astype(jnp.float32) + epsilon)
    return _apply_channel_affine(x, inv_std, -runningmean.astype(jnp.float32) * inv_std)


def batchnormm2d_train(x, runningmean, runningvar, *, epsilon=1e-5, momentum=0.9):
    """Training: normalize with batch stats, return (out, new_rm, new_rv)."""
    B, C, H, W = x.shape
    assert C == runningmean.shape[0]
    mean, var = _channel_stats(x)                 # fused single-pass Pallas stats
    # TODO(synk): the nn.Module running-buffer mutation has no Pallas
    # equivalent; the EMA (exactly as written in the reference forward:
    # new = (1-momentum)*batch_stat + momentum*running, biased var) is
    # returned as new arrays instead.
    new_rm = (1.0 - momentum) * mean + momentum * runningmean.astype(jnp.float32)
    new_rv = (1.0 - momentum) * var + momentum * runningvar.astype(jnp.float32)
    inv_std = jax.lax.rsqrt(var + epsilon)
    out = _apply_channel_affine(x, inv_std, -mean * inv_std)
    return out, new_rm, new_rv


# ----------------------------------------------------------------------------
# Pure-JAX references mirroring the PyTorch forward exactly.
# ----------------------------------------------------------------------------
def _reference_eval(x, rm, rv, epsilon=1e-5):
    m = x.shape[0] * x.shape[2] * x.shape[3]
    rm = rm.reshape(1, -1, 1, 1)
    rv = rv.reshape(1, -1, 1, 1)
    return (x - rm) / jnp.sqrt(m / (m - 1) * rv + epsilon)


def _reference_train(x, epsilon=1e-5):
    mean = jnp.mean(x, axis=(0, 2, 3), keepdims=True)
    var = jnp.var(x, axis=(0, 2, 3), keepdims=True)
    return (x - mean) / jnp.sqrt(var + epsilon)


if __name__ == "__main__":
    eps = 1e-5
    key = jax.random.PRNGKey(0)

    # --- primary shape from the module spec: NCHW (2, 4, 16, 16) ------------
    B, C, H, W = 2, 4, 16, 16
    kx, k1, k2, k3 = jax.random.split(key, 4)
    x = jax.random.normal(kx, (B, C, H, W), dtype=jnp.float32)
    runningmean = 0.1 * jax.random.normal(k1, (C,), jnp.float32)
    runningvar = 1.0 + 0.1 * jax.random.uniform(k2, (C,), jnp.float32)

    out_eval = jax.block_until_ready(
        batchnormm2d_eval(x, runningmean, runningvar, epsilon=eps))
    ref_eval = _reference_eval(x, runningmean, runningvar, eps)
    assert out_eval.shape == (B, C, H, W)
    assert jnp.allclose(out_eval, ref_eval, atol=1e-4, rtol=1e-4), \
        "eval-mode mismatch vs reference"

    out_tr, new_rm, new_rv = batchnormm2d_train(
        x, runningmean, runningvar, epsilon=eps, momentum=0.9)
    out_tr = jax.block_until_ready(out_tr)
    ref_tr = _reference_train(x, eps)
    assert jnp.allclose(out_tr, ref_tr, atol=1e-4, rtol=1e-4), \
        "train-mode mismatch vs reference"
    assert new_rm.shape == (C,) and new_rv.shape == (C,)

    # --- extra check: ragged lane tiles (lanes > lane cap, masked stats) ----
    x2 = jax.random.normal(k3, (2, 2, 200, 200), dtype=jnp.float32)
    rm2 = jnp.zeros((2,), jnp.float32)
    rv2 = jnp.ones((2,), jnp.float32)
    out2, _, _ = batchnormm2d_train(x2, rm2, rv2, epsilon=eps, momentum=0.9)
    out2 = jax.block_until_ready(out2)
    assert jnp.allclose(out2, _reference_train(x2, eps), atol=2e-4, rtol=2e-4), \
        "train-mode mismatch on ragged-tile shape"

    # --- extra check: mid-size tensor exercising the >=2-block grid split ---
    x3 = jax.random.normal(kx, (4, 16, 128, 128), dtype=jnp.float32)
    rm3 = 0.1 * jax.random.normal(k1, (16,), jnp.float32)
    rv3 = 1.0 + 0.1 * jax.random.uniform(k2, (16,), jnp.float32)
    out3 = jax.block_until_ready(batchnormm2d_eval(x3, rm3, rv3, epsilon=eps))
    assert jnp.allclose(out3, _reference_eval(x3, rm3, rv3, eps),
                        atol=1e-4, rtol=1e-4), \
        "eval-mode mismatch on mid-size shape"

    print("KERNEL_OK")
</pallas_src>

<mosaic_0001>
module attributes {stable_mosaic.version = 11 : i64} {
  func.func @_affine_kernel(%arg0: i32, %arg1: i32, %arg2: memref<8x256xf32, #tpu.memory_space<vmem>>, %arg3: memref<8x1xf32, #tpu.memory_space<vmem>>, %arg4: memref<8x1xf32, #tpu.memory_space<vmem>>, %arg5: memref<8x256xf32, #tpu.memory_space<vmem>>) attributes {dimension_semantics = [#tpu.dimension_semantics<parallel>, #tpu.dimension_semantics<parallel>], iteration_bounds = array<i64: 1, 1>, scalar_prefetch = 0 : i64, scratch_operands = 0 : i64, tpu.core_type = #tpu.core_type<tc>, window_params = [{transform_indices = @transform_0, window_bounds = array<i64: 8, 256>}, {transform_indices = @transform_1, window_bounds = array<i64: 8, 1>}, {transform_indices = @transform_2, window_bounds = array<i64: 8, 1>}, {transform_indices = @transform_3, window_bounds = array<i64: 8, 256>}]} {
    %c0 = arith.constant 0 : index
    %c0_0 = arith.constant 0 : index
    %0 = vector.load %arg2[%c0, %c0_0] : memref<8x256xf32, #tpu.memory_space<vmem>>, vector<8x256xf32>
    %c0_1 = arith.constant 0 : index
    %c0_2 = arith.constant 0 : index
    %1 = vector.load %arg3[%c0_1, %c0_2] : memref<8x1xf32, #tpu.memory_space<vmem>>, vector<8x1xf32>
    %2 = vector.broadcast %1 : vector<8x1xf32> to vector<8x256xf32>
    %3 = arith.mulf %0, %2 : vector<8x256xf32>
    %c0_3 = arith.constant 0 : index
    %c0_4 = arith.constant 0 : index
    %4 = vector.load %arg4[%c0_3, %c0_4] : memref<8x1xf32, #tpu.memory_space<vmem>>, vector<8x1xf32>
    %5 = vector.broadcast %4 : vector<8x1xf32> to vector<8x256xf32>
    %6 = arith.addf %3, %5 : vector<8x256xf32>
    %c0_5 = arith.constant 0 : index
    %c0_6 = arith.constant 0 : index
    %7 = vector.load %arg5[%c0_5, %c0_6] : memref<8x256xf32, #tpu.memory_space<vmem>>, vector<8x256xf32>
    tpu.vector_store %arg5[%c0_5, %c0_6], %6 {strides = array<i32>} : memref<8x256xf32, #tpu.memory_space<vmem>>, vector<8x256xf32>,
    return
  }
  func.func @transform_0(%arg0: i32, %arg1: i32) -> (i32, i32) {
    %c0_i32 = arith.constant 0 : i32
    return %arg0, %arg1 : i32, i32
  }
  func.func @transform_1(%arg0: i32, %arg1: i32) -> (i32, i32) {
    %c0_i32 = arith.constant 0 : i32
    %c0_i32_0 = arith.constant 0 : i32
    return %arg0, %c0_i32 : i32, i32
  }
  func.func @transform_2(%arg0: i32, %arg1: i32) -> (i32, i32) {
    %c0_i32 = arith.constant 0 : i32
    %c0_i32_0 = arith.constant 0 : i32
    return %arg0, %c0_i32 : i32, i32
  }
  func.func @transform_3(%arg0: i32, %arg1: i32) -> (i32, i32) {
    %c0_i32 = arith.constant 0 : i32
    return %arg0, %arg1 : i32, i32
  }
}

</mosaic_0001>

<bundles_post_ra>
// kernel: tpu_custom_call.1
= control target key start
LH: loop header
LB: loop body
LE: loop exit
PB: predicated region body
PF: predicated region fallthrough
CT: control target
= control target key end

     0   :  { %v74_v1 = vmov 0   ;;  %s111_s0 = inlined_call_operand.vmem [shape: f32[8,256], index: 0, kind: input, shape index: {}]   ;;  %s112_s1 = inlined_call_operand.vmem [shape: f32[8,1], index: 1, kind: input, shape index: {}]   ;;  %s113_s2 = inlined_call_operand.vmem [shape: f32[8,1], index: 2, kind: input, shape index: {}]   ;;  %s114_s3 = inlined_call_operand.hbm [shape: f32[8,256], index: 3, kind: output, shape index: {}]  }
   0x1   :  { %v17_v0 = vld [vmem:[%s112_s1] sm:$0xff]  ;;  %51 = vset.pattern.permute.xlu0 %v74_v1 }
   0x2   :  { %8 = vsyncpa [#allocation3], 0  ;;  %20 = vperm.xlu0 %51, %v17_v0   ;;  %v25_v2 = vld [vmem:[%s113_s2] sm:$0xff]  ;;  %v16_v5 = vld [vmem:[%s111_s0 + $0x8] sm:$0xff]  ;;  %s75_s20 = smov [#allocation2]  }
   0x3   :  { %v15_v4 = vld [vmem:[%s111_s0] sm:$0xff]  ;;  %s41_s1 = sshll.u32 %s75_s20, 4  ;;  %s42_s1 = int_to_ptr.vmem [resolvable:$true] %s41_s1 }
   0x4   :  { %s52_s2 = scalar_lea.vmem %s42_s1, 256  ;;  %p57_p1 = scmp.lt.s32.totalorder %s42_s1, %s42_s1 }
   0x5   :  { %p53_p0 = scmp.ne.s32.totalorder %s42_s1, %s52_s2  ;;  %p58_p2 = scmp.lt.s32.totalorder %s52_s2, %s52_s2 }
   0x6   :  { %28 = vperm.xlu0 %51, %v25_v2  }
   0x7   :  { %p59_p3 = por %p58_p2, %p57_p1 }
   0x9   :  { %p60_p4 = pnand %p59_p3, %p53_p0 }
  0x7d   :  { %v21_v3 = vpop.permute.xlu0 %20 }
  0x7e   :  { %v23_v6 = vmul.f32 %v21_v3, %v15_v4  ;;  %v24_v7 = vmul.f32 %v21_v3, %v16_v5 }
  0x81   :  { %v29_v8 = vpop.permute.xlu0 %28 }
  0x82   :  { %v31_v9 = vadd.f32 %v29_v8, %v23_v6  ;;  %v32_v10 = vadd.f32 %v29_v8, %v24_v7 }
  0x84   :  { %33 = vst [vmem:[#allocation2] sm:$0xff] %v31_v9  ;;  %34 = vst [vmem:[#allocation2 + $0x8] sm:$0xff] %v32_v10 }
  0x85   :  { %63 = shalt.err (!%p60_p4)
}
  0x86   :  { %44 = dma.vmem_to_hbm [thread:$0]  %s42_s1, 256, %s114_s3, [#allocation3]  }
  0x87   :  { %72 = dma.done.wait [#allocation3], 256  }
  0x88   :  { %73 = vsyncadd [#allocation3], 4294967040 }
  0x89   :  { %48 = vsyncpa [#allocation3], 1 }

</bundles_post_ra>
